<compile_context>
chip_gen: v6e
topology: v6e:2x2x1
jax: 0.10.0
libtpu: 0.0.40
codegen_flags: <defaults>
</compile_context>

<pallas_src>
import functools

import jax
import jax.numpy as jnp
from jax.experimental import pallas as pl
from jax.experimental.pallas import tpu as pltpu

_LANE = 128


def _round_up(x, m):
    return (x + m - 1) // m * m


def _choose_tiling(n):
    """Return (n_pad, tile_m, tile_k)."""
    n128 = _round_up(max(n, 1), _LANE)
    if n128 <= _LANE:
        tile_m = _LANE
    else:
        # >= 2 row tiles whenever possible (keeps both v7x TensorCores busy);
        # cap at 1024 (safe for v7x's 64 MiB VMEM, good for v5e/v6e too).
        cap = min(1024, n128 // 2)
        tile_m = _LANE
        while tile_m * 2 <= cap:
            tile_m *= 2
    n_pad = _round_up(n128, tile_m)
    # Single long-K dot (no reduction grid axis) when the int8 A row panel fits
    # ~4 MiB single-buffered; otherwise chunk the reduction at 2048 columns.
    if tile_m * n_pad <= 4 * 1024 * 1024:
        tile_k = n_pad
    else:
        tile_k = 2048
        n_pad = _round_up(n_pad, tile_k)
    return n_pad, tile_m, tile_k


# ----------------------------------------------------------------------------
# Pass 1: M2pre = dinv * ( relu( dinv * ((A+I) @ Xs) + b1 ) @ W2d )
#   where Xs = dinv * (X @ W1) is precomputed, resident in VMEM.
# ----------------------------------------------------------------------------
def _gcn_pass1_kernel(a_ref, xs_ref, dinv_ref, b1_ref, w2d_ref, m2_ref, acc_ref):
    k = pl.program_id(1)
    tile_k = a_ref.shape[1]

    @pl.when(k == 0)
    def _():
        acc_ref[...] = jnp.zeros_like(acc_ref)

    # Stream exact int8 (A+I) tile; cast to bf16 (VPU) just before the MXU dot.
    off = pl.multiple_of(k * tile_k, tile_k)
    xs = xs_ref[pl.ds(off, tile_k), :]
    a = a_ref[...].astype(jnp.bfloat16)
    acc_ref[...] += jnp.dot(a, xs, preferred_element_type=jnp.float32)

    @pl.when(k == pl.num_programs(1) - 1)
    def _():
        dinv = dinv_ref[...]                      # (tile_m, 1) f32; 0 for padded rows
        h = jnp.maximum(dinv * acc_ref[...] + b1_ref[...], 0.0)
        # dropout: identity (eval mode)
        m2 = dinv * jnp.dot(h, w2d_ref[...], preferred_element_type=jnp.float32)
        # padded rows => dinv == 0 => m2 rows are exactly 0 (safe for pass 2).
        m2_ref[...] = m2.astype(m2_ref.dtype)


# ----------------------------------------------------------------------------
# Pass 2: Xhat = dinv * ((A+I) @ M2pre) + b_eff      (no epilogue matmul)
# ----------------------------------------------------------------------------
def _gcn_pass2_kernel(a_ref, m2_ref, dinv_ref, beff_ref, xhat_ref, acc_ref):
    k = pl.program_id(1)
    tile_k = a_ref.shape[1]

    @pl.when(k == 0)
    def _():
        acc_ref[...] = jnp.zeros_like(acc_ref)

    off = pl.multiple_of(k * tile_k, tile_k)
    m2 = m2_ref[pl.ds(off, tile_k), :]
    a = a_ref[...].astype(jnp.bfloat16)
    acc_ref[...] += jnp.dot(a, m2, preferred_element_type=jnp.float32)

    @pl.when(k == pl.num_programs(1) - 1)
    def _():
        xhat_ref[...] = dinv_ref[...] * acc_ref[...] + beff_ref[...]


def _run_gcn_ae(adj_i8, xs_bf16, dinv, b1, w2d, b_eff, *, tile_m, tile_k):
    n_pad = adj_i8.shape[0]
    h_pad = xs_bf16.shape[1]
    f_pad = w2d.shape[1]
    grid = (n_pad // tile_m, n_pad // tile_k)

    cp = pltpu.CompilerParams(
        dimension_semantics=("parallel", "arbitrary"),
        vmem_limit_bytes=48 * 1024 * 1024,   # <= v7x's 64 MiB physical, > default scoped
    )
    const = lambda i, k: (0, 0)

    # Pass 1: stream int8 A tiles; Xs / weights / biases stay VMEM-resident.
    m2 = pl.pallas_call(
        _gcn_pass1_kernel,
        out_shape=jax.ShapeDtypeStruct((n_pad, f_pad), jnp.bfloat16),
        grid_spec=pltpu.PrefetchScalarGridSpec(
            num_scalar_prefetch=0,
            grid=grid,
            in_specs=[
                pl.BlockSpec((tile_m, tile_k), lambda i, k: (i, k)),   # A+I (int8)
                pl.BlockSpec((n_pad, h_pad), const),                   # dinv*(X@W1), resident
                pl.BlockSpec((tile_m, 1), lambda i, k: (i, 0)),        # dinv row block
                pl.BlockSpec((1, h_pad), const),                       # b1
                pl.BlockSpec((h_pad, f_pad), const),                   # W2 @ Wd
            ],
            out_specs=pl.BlockSpec((tile_m, f_pad), lambda i, k: (i, 0)),
            scratch_shapes=[pltpu.VMEM((tile_m, h_pad), jnp.float32)],
        ),
        compiler_params=cp,
    )(adj_i8, xs_bf16, dinv, b1, w2d)

    # Pass 2: stream int8 A tiles; M2pre / b_eff resident; epilogue is scale + bias only.
    xhat = pl.pallas_call(
        _gcn_pass2_kernel,
        out_shape=jax.ShapeDtypeStruct((n_pad, f_pad), jnp.float32),
        grid_spec=pltpu.PrefetchScalarGridSpec(
            num_scalar_prefetch=0,
            grid=grid,
            in_specs=[
                pl.BlockSpec((tile_m, tile_k), lambda i, k: (i, k)),   # A+I (int8)
                pl.BlockSpec((n_pad, f_pad), const),                   # M2pre, resident
                pl.BlockSpec((tile_m, 1), lambda i, k: (i, 0)),        # dinv row block
                pl.BlockSpec((1, f_pad), const),                       # b2@Wd + bd
            ],
            out_specs=pl.BlockSpec((tile_m, f_pad), lambda i, k: (i, 0)),
            scratch_shapes=[pltpu.VMEM((tile_m, f_pad), jnp.float32)],
        ),
        compiler_params=cp,
    )(adj_i8, m2, dinv, b_eff)
    return xhat


@functools.partial(jax.jit, static_argnames=("num_member",))
def gcn_autoencoder_forward(params, x_member, x_provider, edge_index, num_member):
    """Mirrors GCNAutoencoder.forward semantics (eval mode)."""
    d_m = x_member.shape[1]
    d_p = x_provider.shape[1]
    in_dim = max(d_m, d_p)

    # F.pad(..., (0, max_dim - dim)) on the feature axis, then concat members first.
    x_member_p = jnp.pad(x_member, ((0, 0), (0, in_dim - d_m)))
    x_provider_p = jnp.pad(x_provider, ((0, 0), (0, in_dim - d_p)))
    x = jnp.concatenate([x_member_p, x_provider_p], axis=0).astype(jnp.float32)
    n = x.shape[0]

    # Reproduce the reference edge-index construction exactly (including its
    # offsetting convention): combined = [[prov, memb+nm], [memb+nm, prov]].
    prov = edge_index[0]
    memb = edge_index[1]
    diag = jnp.arange(n, dtype=prov.dtype)
    # Self-loops appended to the scatter list instead of adding eye(n) afterwards.
    rows_all = jnp.concatenate([prov, memb + num_member, diag])
    cols_all = jnp.concatenate([memb + num_member, prov, diag])

    n_pad, tile_m, tile_k = _choose_tiling(n)

    # Exact small-integer (A + I), scattered straight into the padded int8 buffer.
    ones_i8 = jnp.ones(rows_all.shape, jnp.int8)
    adj_i8 = jnp.zeros((n_pad, n_pad), jnp.int8).at[rows_all, cols_all].add(ones_i8)
    # Degrees from the same index list (O(E), no N^2 f32 pass).
    deg = jnp.zeros((n,), jnp.float32).at[rows_all].add(1.0)
    dinv = jnp.where(deg > 0, jax.lax.rsqrt(deg), 0.0)
    dinv_p = jnp.pad(dinv, (0, n_pad - n))[:, None]          # (n_pad, 1) f32, 0 in padded rows

    h_dim = params["w1"].shape[1]
    f_pad = _round_up(in_dim, _LANE)
    h_pad = _round_up(h_dim, _LANE)

    # Small dense precomputes (O(N*F*H), O(F*H*L)) — keep the kernel epilogues minimal.
    xs = dinv[:, None] * (x @ params["w1"])                   # column-side dinv folded here
    xs_p = jnp.pad(xs, ((0, n_pad - n), (0, h_pad - h_dim))).astype(jnp.bfloat16)
    b1_p = jnp.pad(params["b1"], ((0, 0), (0, h_pad - h_dim)))
    w2d = params["w2"] @ params["wd"]                         # (hidden, in_dim)
    w2d_p = jnp.pad(w2d, ((0, h_pad - h_dim), (0, f_pad - in_dim)))
    b_eff = params["b2"] @ params["wd"] + params["bd"]        # (1, in_dim)
    beff_p = jnp.pad(b_eff, ((0, 0), (0, f_pad - in_dim)))

    x_hat_pad = _run_gcn_ae(adj_i8, xs_p, dinv_p, b1_p, w2d_p, beff_p,
                            tile_m=tile_m, tile_k=tile_k)
    x_hat = x_hat_pad[:n, :in_dim]

    x_hat_member = x_hat[:num_member, :d_m]
    x_hat_provider = x_hat[num_member:, :d_p]
    # Reference literally returns zeros for edge_logits.
    edge_logits = jnp.zeros((edge_index.shape[1],), jnp.float32)
    return x_hat_member, x_hat_provider, edge_logits


def make_params(key, in_dim, hidden_dim, latent_dim):
    k1, k2, k3 = jax.random.split(key, 3)
    scale = 0.1
    return {
        "w1": scale * jax.random.normal(k1, (in_dim, hidden_dim), jnp.float32),
        "b1": jnp.zeros((1, hidden_dim), jnp.float32),
        "w2": scale * jax.random.normal(k2, (hidden_dim, latent_dim), jnp.float32),
        "b2": jnp.zeros((1, latent_dim), jnp.float32),
        # decoder nn.Linear(latent_dim, in_dim), stored pre-transposed for z @ Wd
        "wd": scale * jax.random.normal(k3, (latent_dim, in_dim), jnp.float32),
        "bd": jnp.zeros((1, in_dim), jnp.float32),
    }


def _reference_forward(params, x_member, x_provider, edge_index, num_member):
    """Pure-JAX f32 reference of the same forward (correctness check)."""
    d_m, d_p = x_member.shape[1], x_provider.shape[1]
    in_dim = max(d_m, d_p)
    x = jnp.concatenate([
        jnp.pad(x_member, ((0, 0), (0, in_dim - d_m))),
        jnp.pad(x_provider, ((0, 0), (0, in_dim - d_p))),
    ], axis=0).astype(jnp.float32)
    n = x.shape[0]
    prov, memb = edge_index[0], edge_index[1]
    rows = jnp.concatenate([prov, memb + num_member])
    cols = jnp.concatenate([memb + num_member, prov])
    adj = jnp.zeros((n, n), jnp.float32).at[rows, cols].add(1.0) + jnp.eye(n)
    deg = jnp.sum(adj, axis=1)
    dinv = jnp.where(deg > 0, 1.0 / jnp.sqrt(deg), 0.0)
    a_hat = dinv[:, None] * adj * dinv[None, :]
    h = jnp.maximum(a_hat @ (x @ params["w1"]) + params["b1"], 0.0)
    z = a_hat @ (h @ params["w2"]) + params["b2"]
    x_hat = z @ params["wd"] + params["bd"]
    return x_hat[:num_member, :d_m], x_hat[num_member:, :d_p]


if __name__ == "__main__":
    key = jax.random.PRNGKey(0)
    k_xm, k_xp, k_ep, k_em, k_params = jax.random.split(key, 5)

    # Small synthetic heterogeneous graph:
    #   members:   8 nodes, 12 features
    #   providers: 8 nodes, 16 features
    #   edges:     20 provider->member edges
    num_member, num_provider = 8, 8
    d_member, d_provider = 12, 16
    num_edges = 20
    hidden_dim, latent_dim = 32, 8
    in_dim = max(d_member, d_provider)

    x_member = jax.random.normal(k_xm, (num_member, d_member), jnp.float32)
    x_provider = jax.random.normal(k_xp, (num_provider, d_provider), jnp.float32)
    edge_index = jnp.stack([
        jax.random.randint(k_ep, (num_edges,), 0, num_provider),
        jax.random.randint(k_em, (num_edges,), 0, num_member),
    ], axis=0).astype(jnp.int32)

    params = make_params(k_params, in_dim, hidden_dim, latent_dim)

    x_hat_member, x_hat_provider, edge_logits = gcn_autoencoder_forward(
        params, x_member, x_provider, edge_index, num_member)
    jax.block_until_ready((x_hat_member, x_hat_provider, edge_logits))

    assert x_hat_member.shape == (num_member, d_member)
    assert x_hat_provider.shape == (num_provider, d_provider)
    assert edge_logits.shape == (num_edges,)

    # Check vs pure-JAX f32 reference (A is exact int8; only Xs/M2 are bf16-rounded,
    # so tolerance is tighter than the previous bf16-A_hat version).
    ref_m, ref_p = _reference_forward(params, x_member, x_provider, edge_index, num_member)
    assert jnp.allclose(x_hat_member, ref_m, atol=3e-2, rtol=3e-2)
    assert jnp.allclose(x_hat_provider, ref_p, atol=3e-2, rtol=3e-2)

    print("KERNEL_OK")
</pallas_src>

<mosaic_0001>
module attributes {stable_mosaic.version = 11 : i64} {
  func.func private @main(%arg0: i32) attributes {dimension_semantics = [#tpu.dimension_semantics<core_parallel>], iteration_bounds = array<i64: 2>, tpu.core_type = #tpu.core_type<sc_scalar_subcore>, window_params = []} {
    return
  }
}

module attributes {stable_mosaic.version = 11 : i64} {
  func.func private @main(%arg0: i32) attributes {dimension_semantics = [#tpu.dimension_semantics<core_parallel>], iteration_bounds = array<i64: 2>, tpu.core_type = #tpu.core_type<sc_scalar_subcore>, window_params = []} {
    return
  }
}

module attributes {stable_mosaic.version = 11 : i64} {
  func.func @_gcn_pass1_kernel(%arg0: i32, %arg1: i32, %arg2: memref<128x128xi8, #tpu.memory_space<vmem>>, %arg3: memref<128x128xbf16, #tpu.memory_space<vmem>>, %arg4: memref<128x1xf32, #tpu.memory_space<vmem>>, %arg5: memref<1x128xf32, #tpu.memory_space<vmem>>, %arg6: memref<128x128xf32, #tpu.memory_space<vmem>>, %arg7: memref<128x128xbf16, #tpu.memory_space<vmem>>, %arg8: memref<128x128xf32, #tpu.memory_space<vmem>>) attributes {dimension_semantics = [#tpu.dimension_semantics<parallel>, #tpu.dimension_semantics<arbitrary>], iteration_bounds = array<i64: 1, 1>, scalar_prefetch = 0 : i64, scratch_operands = 1 : i64, tpu.core_type = #tpu.core_type<tc>, window_params = [{transform_indices = @transform_0, window_bounds = array<i64: 128, 128>}, {pipeline_mode = #tpu.pipeline_mode<synchronous>, transform_indices = @transform_1, window_bounds = array<i64: 128, 128>}, {transform_indices = @transform_2, window_bounds = array<i64: 128, 1>}, {pipeline_mode = #tpu.pipeline_mode<synchronous>, transform_indices = @transform_3, window_bounds = array<i64: 1, 128>}, {pipeline_mode = #tpu.pipeline_mode<synchronous>, transform_indices = @transform_4, window_bounds = array<i64: 128, 128>}, {transform_indices = @transform_5, window_bounds = array<i64: 128, 128>}]} {
    %c0_i32 = arith.constant 0 : i32
    %0 = arith.cmpi eq, %arg1, %c0_i32 : i32
    %1 = arith.extui %0 : i1 to i32
    %c0_i32_0 = arith.constant 0 : i32
    %2 = arith.cmpi ne, %1, %c0_i32_0 : i32
    scf.if %2 {
      %cst_9 = arith.constant 0.000000e+00 : f32
      %16 = vector.broadcast %cst_9 : f32 to vector<128x128xf32>
      %c0_10 = arith.constant 0 : index
      %c0_11 = arith.constant 0 : index
      %17 = vector.load %arg8[%c0_10, %c0_11] : memref<128x128xf32, #tpu.memory_space<vmem>>, vector<128x128xf32>
      tpu.vector_store %arg8[%c0_10, %c0_11], %16 {strides = array<i32>} : memref<128x128xf32, #tpu.memory_space<vmem>>, vector<128x128xf32>,
    } else {
    }
    %c128_i32 = arith.constant 128 : i32
    %3 = arith.muli %arg1, %c128_i32 : i32
    %4 = tpu.assume_multiple %3, 128 : i32
    %5 = arith.index_cast %4 : i32 to index
    %c0 = arith.constant 0 : index
    %6 = vector.load %arg3[%5, %c0] : memref<128x128xbf16, #tpu.memory_space<vmem>>, vector<128x128xbf16>
    %c0_1 = arith.constant 0 : index
    %c0_2 = arith.constant 0 : index
    %7 = vector.load %arg2[%c0_1, %c0_2] : memref<128x128xi8, #tpu.memory_space<vmem>>, vector<128x128xi8>
    %8 = arith.sitofp %7 : vector<128x128xi8> to vector<128x128xbf16>
    %c0_3 = arith.constant 0 : index
    %c0_4 = arith.constant 0 : index
    %9 = vector.load %arg8[%c0_3, %c0_4] : memref<128x128xf32, #tpu.memory_space<vmem>>, vector<128x128xf32>
    %cst = arith.constant dense<0.000000e+00> : vector<128x128xf32>
    %10 = tpu.matmul %8, %6, %cst {dimension_numbers = #tpu.dot_dimension_numbers<[1], [0], [0], [1], [0, 0, 1, 1], [], []>} : vector<128x128xbf16>, vector<128x128xbf16>, vector<128x128xf32> -> vector<128x128xf32>
    %11 = arith.addf %9, %10 : vector<128x128xf32>
    %c0_5 = arith.constant 0 : index
    %c0_6 = arith.constant 0 : index
    %12 = vector.load %arg8[%c0_5, %c0_6] : memref<128x128xf32, #tpu.memory_space<vmem>>, vector<128x128xf32>
    tpu.vector_store %arg8[%c0_5, %c0_6], %11 {strides = array<i32>} : memref<128x128xf32, #tpu.memory_space<vmem>>, vector<128x128xf32>,
    %c0_i32_7 = arith.constant 0 : i32
    %13 = arith.cmpi eq, %arg1, %c0_i32_7 : i32
    %14 = arith.extui %13 : i1 to i32
    %c0_i32_8 = arith.constant 0 : i32
    %15 = arith.cmpi ne, %14, %c0_i32_8 : i32
    scf.if %15 {
      %c0_9 = arith.constant 0 : index
      %c0_10 = arith.constant 0 : index
      %16 = vector.load %arg4[%c0_9, %c0_10] : memref<128x1xf32, #tpu.memory_space<vmem>>, vector<128x1xf32>
      %c0_11 = arith.constant 0 : index
      %c0_12 = arith.constant 0 : index
      %17 = vector.load %arg8[%c0_11, %c0_12] : memref<128x128xf32, #tpu.memory_space<vmem>>, vector<128x128xf32>
      %18 = vector.broadcast %16 : vector<128x1xf32> to vector<128x128xf32>
      %19 = arith.mulf %18, %17 : vector<128x128xf32>
      %c0_13 = arith.constant 0 : index
      %c0_14 = arith.constant 0 : index
      %20 = vector.load %arg5[%c0_13, %c0_14] : memref<1x128xf32, #tpu.memory_space<vmem>>, vector<1x128xf32>
      %21 = vector.broadcast %20 : vector<1x128xf32> to vector<128x128xf32>
      %22 = arith.addf %19, %21 : vector<128x128xf32>
      %cst_15 = arith.constant 0.000000e+00 : f32
      %23 = vector.broadcast %cst_15 : f32 to vector<128x128xf32>
      %24 = arith.maximumf %22, %23 : vector<128x128xf32>
      %c0_16 = arith.constant 0 : index
      %c0_17 = arith.constant 0 : index
      %25 = vector.load %arg6[%c0_16, %c0_17] : memref<128x128xf32, #tpu.memory_space<vmem>>, vector<128x128xf32>
      %cst_18 = arith.constant dense<0.000000e+00> : vector<128x128xf32>
      %26 = tpu.matmul %24, %25, %cst_18 {dimension_numbers = #tpu.dot_dimension_numbers<[1], [0], [0], [1], [0, 0, 1, 1], [], []>} : vector<128x128xf32>, vector<128x128xf32>, vector<128x128xf32> -> vector<128x128xf32>
      %27 = vector.broadcast %16 : vector<128x1xf32> to vector<128x128xf32>
      %28 = arith.mulf %27, %26 : vector<128x128xf32>
      %29 = arith.truncf %28 : vector<128x128xf32> to vector<128x128xbf16>
      %c0_19 = arith.constant 0 : index
      %c0_20 = arith.constant 0 : index
      %30 = vector.load %arg7[%c0_19, %c0_20] : memref<128x128xbf16, #tpu.memory_space<vmem>>, vector<128x128xbf16>
      tpu.vector_store %arg7[%c0_19, %c0_20], %29 {strides = array<i32>} : memref<128x128xbf16, #tpu.memory_space<vmem>>, vector<128x128xbf16>,
    } else {
    }
    return
  }
  func.func @transform_0(%arg0: i32, %arg1: i32) -> (i32, i32) {
    %c0_i32 = arith.constant 0 : i32
    return %arg0, %arg1 : i32, i32
  }
  func.func @transform_1(%arg0: i32, %arg1: i32) -> (i32, i32) {
    %c0_i32 = arith.constant 0 : i32
    %c0_i32_0 = arith.constant 0 : i32
    %c0_i32_1 = arith.constant 0 : i32
    return %c0_i32, %c0_i32_0 : i32, i32
  }
  func.func @transform_2(%arg0: i32, %arg1: i32) -> (i32, i32) {
    %c0_i32 = arith.constant 0 : i32
    %c0_i32_0 = arith.constant 0 : i32
    return %arg0, %c0_i32 : i32, i32
  }
  func.func @transform_3(%arg0: i32, %arg1: i32) -> (i32, i32) {
    %c0_i32 = arith.constant 0 : i32
    %c0_i32_0 = arith.constant 0 : i32
    %c0_i32_1 = arith.constant 0 : i32
    return %c0_i32, %c0_i32_0 : i32, i32
  }
  func.func @transform_4(%arg0: i32, %arg1: i32) -> (i32, i32) {
    %c0_i32 = arith.constant 0 : i32
    %c0_i32_0 = arith.constant 0 : i32
    %c0_i32_1 = arith.constant 0 : i32
    return %c0_i32, %c0_i32_0 : i32, i32
  }
  func.func @transform_5(%arg0: i32, %arg1: i32) -> (i32, i32) {
    %c0_i32 = arith.constant 0 : i32
    %c0_i32_0 = arith.constant 0 : i32
    return %arg0, %c0_i32 : i32, i32
  }
}

module attributes {stable_mosaic.version = 11 : i64} {
  func.func @_gcn_pass2_kernel(%arg0: i32, %arg1: i32, %arg2: memref<128x128xi8, #tpu.memory_space<vmem>>, %arg3: memref<128x128xbf16, #tpu.memory_space<vmem>>, %arg4: memref<128x1xf32, #tpu.memory_space<vmem>>, %arg5: memref<1x128xf32, #tpu.memory_space<vmem>>, %arg6: memref<128x128xf32, #tpu.memory_space<vmem>>, %arg7: memref<128x128xf32, #tpu.memory_space<vmem>>) attributes {dimension_semantics = [#tpu.dimension_semantics<parallel>, #tpu.dimension_semantics<arbitrary>], iteration_bounds = array<i64: 1, 1>, scalar_prefetch = 0 : i64, scratch_operands = 1 : i64, tpu.core_type = #tpu.core_type<tc>, window_params = [{transform_indices = @transform_0, window_bounds = array<i64: 128, 128>}, {pipeline_mode = #tpu.pipeline_mode<synchronous>, transform_indices = @transform_1, window_bounds = array<i64: 128, 128>}, {transform_indices = @transform_2, window_bounds = array<i64: 128, 1>}, {pipeline_mode = #tpu.pipeline_mode<synchronous>, transform_indices = @transform_3, window_bounds = array<i64: 1, 128>}, {transform_indices = @transform_4, window_bounds = array<i64: 128, 128>}]} {
    %c0_i32 = arith.constant 0 : i32
    %0 = arith.cmpi eq, %arg1, %c0_i32 : i32
    %1 = arith.extui %0 : i1 to i32
    %c0_i32_0 = arith.constant 0 : i32
    %2 = arith.cmpi ne, %1, %c0_i32_0 : i32
    scf.if %2 {
      %cst_9 = arith.constant 0.000000e+00 : f32
      %16 = vector.broadcast %cst_9 : f32 to vector<128x128xf32>
      %c0_10 = arith.constant 0 : index
      %c0_11 = arith.constant 0 : index
      %17 = vector.load %arg7[%c0_10, %c0_11] : memref<128x128xf32, #tpu.memory_space<vmem>>, vector<128x128xf32>
      tpu.vector_store %arg7[%c0_10, %c0_11], %16 {strides = array<i32>} : memref<128x128xf32, #tpu.memory_space<vmem>>, vector<128x128xf32>,
    } else {
    }
    %c128_i32 = arith.constant 128 : i32
    %3 = arith.muli %arg1, %c128_i32 : i32
    %4 = tpu.assume_multiple %3, 128 : i32
    %5 = arith.index_cast %4 : i32 to index
    %c0 = arith.constant 0 : index
    %6 = vector.load %arg3[%5, %c0] : memref<128x128xbf16, #tpu.memory_space<vmem>>, vector<128x128xbf16>
    %c0_1 = arith.constant 0 : index
    %c0_2 = arith.constant 0 : index
    %7 = vector.load %arg2[%c0_1, %c0_2] : memref<128x128xi8, #tpu.memory_space<vmem>>, vector<128x128xi8>
    %8 = arith.sitofp %7 : vector<128x128xi8> to vector<128x128xbf16>
    %c0_3 = arith.constant 0 : index
    %c0_4 = arith.constant 0 : index
    %9 = vector.load %arg7[%c0_3, %c0_4] : memref<128x128xf32, #tpu.memory_space<vmem>>, vector<128x128xf32>
    %cst = arith.constant dense<0.000000e+00> : vector<128x128xf32>
    %10 = tpu.matmul %8, %6, %cst {dimension_numbers = #tpu.dot_dimension_numbers<[1], [0], [0], [1], [0, 0, 1, 1], [], []>} : vector<128x128xbf16>, vector<128x128xbf16>, vector<128x128xf32> -> vector<128x128xf32>
    %11 = arith.addf %9, %10 : vector<128x128xf32>
    %c0_5 = arith.constant 0 : index
    %c0_6 = arith.constant 0 : index
    %12 = vector.load %arg7[%c0_5, %c0_6] : memref<128x128xf32, #tpu.memory_space<vmem>>, vector<128x128xf32>
    tpu.vector_store %arg7[%c0_5, %c0_6], %11 {strides = array<i32>} : memref<128x128xf32, #tpu.memory_space<vmem>>, vector<128x128xf32>,
    %c0_i32_7 = arith.constant 0 : i32
    %13 = arith.cmpi eq, %arg1, %c0_i32_7 : i32
    %14 = arith.extui %13 : i1 to i32
    %c0_i32_8 = arith.constant 0 : i32
    %15 = arith.cmpi ne, %14, %c0_i32_8 : i32
    scf.if %15 {
      %c0_9 = arith.constant 0 : index
      %c0_10 = arith.constant 0 : index
      %16 = vector.load %arg4[%c0_9, %c0_10] : memref<128x1xf32, #tpu.memory_space<vmem>>, vector<128x1xf32>
      %c0_11 = arith.constant 0 : index
      %c0_12 = arith.constant 0 : index
      %17 = vector.load %arg7[%c0_11, %c0_12] : memref<128x128xf32, #tpu.memory_space<vmem>>, vector<128x128xf32>
      %18 = vector.broadcast %16 : vector<128x1xf32> to vector<128x128xf32>
      %19 = arith.mulf %18, %17 : vector<128x128xf32>
      %c0_13 = arith.constant 0 : index
      %c0_14 = arith.constant 0 : index
      %20 = vector.load %arg5[%c0_13, %c0_14] : memref<1x128xf32, #tpu.memory_space<vmem>>, vector<1x128xf32>
      %21 = vector.broadcast %20 : vector<1x128xf32> to vector<128x128xf32>
      %22 = arith.addf %19, %21 : vector<128x128xf32>
      %c0_15 = arith.constant 0 : index
      %c0_16 = arith.constant 0 : index
      %23 = vector.load %arg6[%c0_15, %c0_16] : memref<128x128xf32, #tpu.memory_space<vmem>>, vector<128x128xf32>
      tpu.vector_store %arg6[%c0_15, %c0_16], %22 {strides = array<i32>} : memref<128x128xf32, #tpu.memory_space<vmem>>, vector<128x128xf32>,
    } else {
    }
    return
  }
  func.func @transform_0(%arg0: i32, %arg1: i32) -> (i32, i32) {
    %c0_i32 = arith.constant 0 : i32
    return %arg0, %arg1 : i32, i32
  }
  func.func @transform_1(%arg0: i32, %arg1: i32) -> (i32, i32) {
    %c0_i32 = arith.constant 0 : i32
    %c0_i32_0 = arith.constant 0 : i32
    %c0_i32_1 = arith.constant 0 : i32
    return %c0_i32, %c0_i32_0 : i32, i32
  }
  func.func @transform_2(%arg0: i32, %arg1: i32) -> (i32, i32) {
    %c0_i32 = arith.constant 0 : i32
    %c0_i32_0 = arith.constant 0 : i32
    return %arg0, %c0_i32 : i32, i32
  }
  func.func @transform_3(%arg0: i32, %arg1: i32) -> (i32, i32) {
    %c0_i32 = arith.constant 0 : i32
    %c0_i32_0 = arith.constant 0 : i32
    %c0_i32_1 = arith.constant 0 : i32
    return %c0_i32, %c0_i32_0 : i32, i32
  }
  func.func @transform_4(%arg0: i32, %arg1: i32) -> (i32, i32) {
    %c0_i32 = arith.constant 0 : i32
    %c0_i32_0 = arith.constant 0 : i32
    return %arg0, %c0_i32 : i32, i32
  }
}

</mosaic_0001>

<bundles_post_ra>
// kernel: gcn_autoencoder_forward.3
= control target key start
LH: loop header
LB: loop body
LE: loop exit
PB: predicated region body
PF: predicated region fallthrough
CT: control target
= control target key end

     0   :  { %v600_v1 = vmov 0   ;;  %s818_s1 = inlined_call_operand.vmem [shape: bf16[128,128], index: 1, kind: input, shape index: {}]   ;;  %s819_s0 = inlined_call_operand.vmem [shape: s8[128,128], index: 0, kind: input, shape index: {}]   ;;  %s820_s2 = inlined_call_operand.vmem [shape: f32[128,1], index: 2, kind: input, shape index: {}]   ;;  %s821_s3 = inlined_call_operand.vmem [shape: f32[1,128], index: 3, kind: input, shape index: {}]   ;;  %s822_s4 = inlined_call_operand.vmem [shape: f32[128,128], index: 4, kind: output, shape index: {}]  }
   0x1   :  { %v592_v0 = vld [vmem:[%s818_s1 + $0x38] sm:$0xff]   ;;  %591 = vset.pattern.permute.xlu1 %v600_v1  ;;  %590 = vset.pattern.permute.xlu0 %v600_v1  ;;  %v593_v2 = vld [vmem:[%s818_s1 + $0x30] sm:$0xff]   ;;  %v594_v3 = vld [vmem:[%s818_s1 + $0x28] sm:$0xff]  }
   0x2   :  { %541 = vmatprep.subr.bf16.mxu0 %v592_v0  ;;  %573 = vmatprep.subr.bf16.mxu1 %v592_v0  ;;  %v595_v4 = vld [vmem:[%s818_s1 + $0x20] sm:$0xff]   ;;  %v67_v7 = vld [vmem:[%s819_s0 + $0x10] sm:$0x3]  ;;  %v68_v10 = vld [vmem:[%s819_s0 + $0x12] sm:$0x3] }
   0x3   :  { %542 = vmatpush3.bf16.msra.mxu0 %v592_v0  ;;  %581 = vmatpush3.bf16.msra.mxu1 %v592_v0  ;;  %v59_v5 = vld [vmem:[%s819_s0] sm:$0x3]  ;;  %v60_v6 = vld [vmem:[%s819_s0 + $0x2] sm:$0x3]  ;;  %v83_v11 = vunpack.c.l.s8.bf16 %v67_v7  ;;  %v84_v12 = vunpack.c.l.s8.bf16 %v68_v10  ;;  %v596_v14 = vld [vmem:[%s818_s1 + $0x18] sm:$0xff]  }
   0x4   :  { %543 = vmatprep.subr.bf16.mxu0 %v593_v2  ;;  %574 = vmatprep.subr.bf16.mxu1 %v593_v2  ;;  %v75_v8 = vunpack.c.l.s8.bf16 %v59_v5  ;;  %v76_v9 = vunpack.c.l.s8.bf16 %v60_v6  ;;  %v337_v16 = vld [vmem:[%s820_s2 + $0x10] sm:$0xff]  ;;  %v335_v17 = vld [vmem:[%s820_s2] sm:$0xff]  ;;  %v338_v18 = vld [vmem:[%s820_s2 + $0x18] sm:$0xff] }
   0x5   :  { %v512_v15 = vcombine.low %v83_v11, %v84_v12  ;;  %379 = vperm.xlu1 %591, %v337_v16   ;;  %v597_v19 = vld [vmem:[%s818_s1 + $0x10] sm:$0xff]   ;;  %369 = vperm.xlu0 %590, %v335_v17   ;;  %v336_v20 = vld [vmem:[%s820_s2 + $0x8] sm:$0xff]  ;;  %v61_v23 = vld [vmem:[%s819_s0 + $0x4] sm:$0x3] }
   0x6   :  { %v508_v13 = vcombine.low %v75_v8, %v76_v9  ;;  %v340_v21 = vld [vmem:[%s820_s2 + $0x28] sm:$0xff]  ;;  %v599_v24 = vld [vmem:[%s818_s1] sm:$0xff]   ;;  %v69_v26 = vld [vmem:[%s819_s0 + $0x14] sm:$0x3]  ;;  %v77_v34 = vunpack.c.l.s8.bf16 %v61_v23 }
   0x7   :  { %544 = vmatpush3.bf16.msra.mxu0 %v593_v2  ;;  %582 = vmatpush3.bf16.msra.mxu1 %v593_v2  ;;  %v598_v22 = vld [vmem:[%s818_s1 + $0x8] sm:$0xff]   ;;  %v62_v25 = vld [vmem:[%s819_s0 + $0x6] sm:$0x3]  ;;  %v70_v28 = vld [vmem:[%s819_s0 + $0x16] sm:$0x3]  ;;  %v85_v36 = vunpack.c.l.s8.bf16 %v69_v26 }
   0x8   :  { %545 = vmatprep.subr.bf16.mxu0 %v594_v3  ;;  %575 = vmatprep.subr.bf16.mxu1 %v594_v3  ;;  %v339_v27 = vld [vmem:[%s820_s2 + $0x20] sm:$0xff]  ;;  %v63_v29 = vld [vmem:[%s819_s0 + $0x8] sm:$0x3]  ;;  %v342_v30 = vld [vmem:[%s820_s2 + $0x38] sm:$0xff]  ;;  %v78_v35 = vunpack.c.l.s8.bf16 %v62_v25  ;;  %v86_v37 = vunpack.c.l.s8.bf16 %v70_v28 }
   0x9   :  { %557 = vmatprep.mubr.bf16.mxu0 %v508_v13  ;;  %565 = vmatprep.mubr.bf16.mxu1 %v512_v15  ;;  %v64_v31 = vld [vmem:[%s819_s0 + $0xa] sm:$0x3]  ;;  %v71_v32 = vld [vmem:[%s819_s0 + $0x18] sm:$0x3]  ;;  %v72_v33 = vld [vmem:[%s819_s0 + $0x1a] sm:$0x3]  ;;  %v79_v39 = vunpack.c.l.s8.bf16 %v63_v29 }
   0xa   :  { %384 = vperm.xlu1 %591, %v338_v18   ;;  %374 = vperm.xlu0 %590, %v336_v20   ;;  %v341_v38 = vld [vmem:[%s820_s2 + $0x30] sm:$0xff]  ;;  %v80_v40 = vunpack.c.l.s8.bf16 %v64_v31  ;;  %v87_v41 = vunpack.c.l.s8.bf16 %v71_v32  ;;  %v88_v42 = vunpack.c.l.s8.bf16 %v72_v33  ;;  %v344_v43 = vld [vmem:[%s820_s2 + $0x48] sm:$0xff]  ;;  %v509_v44 = vcombine.low %v77_v34, %v78_v35  ;;  %v343_v47 = vld [vmem:[%s820_s2 + $0x40] sm:$0xff] }
   0xb   :  { %546 = vmatpush3.bf16.msra.mxu0 %v594_v3  ;;  %583 = vmatpush3.bf16.msra.mxu1 %v594_v3  ;;  %v513_v45 = vcombine.low %v85_v36, %v86_v37  ;;  %v65_v46 = vld [vmem:[%s819_s0 + $0xc] sm:$0x3]  ;;  %v66_v50 = vld [vmem:[%s819_s0 + $0xe] sm:$0x3]  ;;  %v73_v51 = vld [vmem:[%s819_s0 + $0x1c] sm:$0x3] }
   0xc   :  { %547 = vmatprep.subr.bf16.mxu0 %v595_v4  ;;  %576 = vmatprep.subr.bf16.mxu1 %v595_v4  ;;  %v510_v48 = vcombine.low %v79_v39, %v80_v40  ;;  %v514_v49 = vcombine.low %v87_v41, %v88_v42  ;;  %v74_v52 = vld [vmem:[%s819_s0 + $0x1e] sm:$0x3]  ;;  %v81_v54 = vunpack.c.l.s8.bf16 %v65_v46  ;;  %v82_v55 = vunpack.c.l.s8.bf16 %v66_v50  ;;  %v345_v58 = vld [vmem:[%s820_s2 + $0x50] sm:$0xff]  ;;  %v348_v59 = vld [vmem:[%s820_s2 + $0x68] sm:$0xff] }
   0xd   :  { %v346_v53 = vld [vmem:[%s820_s2 + $0x58] sm:$0xff]  ;;  %v89_v56 = vunpack.c.l.s8.bf16 %v73_v51  ;;  %v90_v57 = vunpack.c.l.s8.bf16 %v74_v52  ;;  %v347_v62 = vld [vmem:[%s820_s2 + $0x60] sm:$0xff]  ;;  %v349_v0 = vld [vmem:[%s820_s2 + $0x70] sm:$0xff] }
   0xe   :  { %394 = vperm.xlu1 %591, %v340_v21   ;;  %389 = vperm.xlu0 %590, %v339_v27   ;;  %v511_v60 = vcombine.low %v81_v54, %v82_v55  ;;  %v350_v63 = vld [vmem:[%s820_s2 + $0x78] sm:$0xff] }
   0xf   :  { %548 = vmatpush3.bf16.msra.mxu0 %v595_v4  ;;  %584 = vmatpush3.bf16.msra.mxu1 %v595_v4  ;;  %v515_v61 = vcombine.low %v89_v56, %v90_v57 }
  0x10   :  { %549 = vmatprep.subr.bf16.mxu0 %v596_v14  ;;  %577 = vmatprep.subr.bf16.mxu1 %v596_v14 }
  0x12   :  { %404 = vperm.xlu1 %591, %v342_v30   ;;  %399 = vperm.xlu0 %590, %v341_v38  }
  0x13   :  { %550 = vmatpush3.bf16.msra.mxu0 %v596_v14  ;;  %585 = vmatpush3.bf16.msra.mxu1 %v596_v14  ;;  %v751_v14 = vld [vmem:[%s821_s3] ss:$0 sm:$0xff] }
  0x14   :  { %551 = vmatprep.subr.bf16.mxu0 %v597_v19  ;;  %578 = vmatprep.subr.bf16.mxu1 %v597_v19 }
  0x16   :  { %414 = vperm.xlu1 %591, %v344_v43   ;;  %409 = vperm.xlu0 %590, %v343_v47  }
  0x17   :  { %552 = vmatpush3.bf16.msra.mxu0 %v597_v19  ;;  %586 = vmatpush3.bf16.msra.mxu1 %v597_v19 }
  0x18   :  { %553 = vmatprep.subr.bf16.mxu0 %v598_v22  ;;  %579 = vmatprep.subr.bf16.mxu1 %v598_v22 }
  0x1a   :  { %424 = vperm.xlu1 %591, %v346_v53   ;;  %419 = vperm.xlu0 %590, %v345_v58  }
  0x1b   :  { %554 = vmatpush3.bf16.msra.mxu0 %v598_v22  ;;  %587 = vmatpush3.bf16.msra.mxu1 %v598_v22 }
  0x1c   :  { %555 = vmatprep.subr.bf16.mxu0 %v599_v24  ;;  %580 = vmatprep.subr.bf16.mxu1 %v599_v24 }
  0x1e   :  { %434 = vperm.xlu1 %591, %v348_v59   ;;  %429 = vperm.xlu0 %590, %v347_v62  }
  0x1f   :  { %556 = vmatpush3.bf16.msra.mxu0 %v599_v24  ;;  %588 = vmatpush3.bf16.msra.mxu1 %v599_v24 }
  0x22   :  { %558 = vmatmul.mubr.bf16.vlgmr.msra.gmra.mxu0 %v509_v44  ;;  %566 = vmatmul.mubr.bf16.vlgmr.msra.gmra.mxu1 %v513_v45 }
  0x23   :  { %561 = vmatprep.mubr.bf16.mxu0 %v510_v48  ;;  %569 = vmatprep.mubr.bf16.mxu1 %v514_v49 }
  0x24   :  { %444 = vperm.xlu1 %591, %v350_v63   ;;  %439 = vperm.xlu0 %590, %v349_v0  }
  0x2a   :  { %562 = vmatmul.mubr.bf16.gmra.mxu0 %v511_v60  ;;  %570 = vmatmul.mubr.bf16.gmra.mxu1 %v515_v61 }
  0x80   :  { %v370_v1 = vpop.permute.xlu0 %369  ;;  %v380_v2 = vpop.permute.xlu1 %379 }
  0x85   :  { %v375_v3 = vpop.permute.xlu0 %374  ;;  %v385_v4 = vpop.permute.xlu1 %384 }
  0x89   :  { %v390_v5 = vpop.permute.xlu0 %389  ;;  %v746_v6 = vpop.permute.xlu1 %394 }
  0x8d   :  { %v400_v7 = vpop.permute.xlu0 %399  ;;  %v405_v8 = vpop.permute.xlu1 %404 }
  0x91   :  { %v410_v9 = vpop.permute.xlu0 %409  ;;  %v415_v10 = vpop.permute.xlu1 %414 }
  0x95   :  { %v420_v11 = vpop.permute.xlu0 %419  ;;  %v425_v12 = vpop.permute.xlu1 %424 }
  0x99   :  { %v430_v16 = vpop.permute.xlu0 %429  ;;  %v435_v27 = vpop.permute.xlu1 %434 }
  0x9f   :  { %v440_v34 = vpop.permute.xlu0 %439  ;;  %v445_v47 = vpop.permute.xlu1 %444 }
  0xe2   :  { %v559_v13 = vpop.f32.mrf.mxu0  ;;  %v567_v15 = vpop.f32.mrf.mxu1 }
  0xe3   :  { %v449_v17 = vmul.f32 %v559_v13, %v380_v2  ;;  %v457_v18 = vmul.f32 %v567_v15, %v420_v11 }
  0xe4   :  { %v237_v19 = vpop.f32.mrf.mxu0  ;;  %v269_v20 = vpop.f32.mrf.mxu1 }
  0xe5   :  { %v472_v21 = vadd.f32 %v751_v14, %v449_v17  ;;  %v480_v22 = vadd.f32 %v751_v14, %v457_v18  ;;  %v447_v23 = vmul.f32 %v370_v1, %v237_v19  ;;  %v455_v24 = vmul.f32 %v410_v9, %v269_v20 }
  0xe6   :  { %v560_v25 = vpop.f32.mrf.mxu0  ;;  %v568_v26 = vpop.f32.mrf.mxu1 }
  0xe7   :  { %488 = vst [vmem:[%s822_s4 + $0x10] sm:$0xff] %v472_v21  ;;  %496 = vst [vmem:[%s822_s4 + $0x50] sm:$0xff] %v480_v22  ;;  %v470_v28 = vadd.f32 %v751_v14, %v447_v23  ;;  %v478_v29 = vadd.f32 %v751_v14, %v455_v24  ;;  %v450_v30 = vmul.f32 %v560_v25, %v385_v4 }
  0xe8   :  { %v458_v31 = vmul.f32 %v568_v26, %v425_v12  ;;  %v240_v32 = vpop.f32.mrf.mxu0  ;;  %v272_v33 = vpop.f32.mrf.mxu1 }
  0xe9   :  { %486 = vst [vmem:[%s822_s4] sm:$0xff] %v470_v28  ;;  %494 = vst [vmem:[%s822_s4 + $0x40] sm:$0xff] %v478_v29  ;;  %v473_v35 = vadd.f32 %v751_v14, %v450_v30  ;;  %v448_v37 = vmul.f32 %v375_v3, %v240_v32  ;;  %v456_v38 = vmul.f32 %v415_v10, %v272_v33 }
  0xea   :  { %v481_v36 = vadd.f32 %v751_v14, %v458_v31  ;;  %v563_v39 = vpop.f32.mrf.mxu0  ;;  %v571_v40 = vpop.f32.mrf.mxu1 }
  0xeb   :  { %489 = vst [vmem:[%s822_s4 + $0x18] sm:$0xff] %v473_v35  ;;  %v471_v41 = vadd.f32 %v751_v14, %v448_v37  ;;  %v479_v42 = vadd.f32 %v751_v14, %v456_v38  ;;  %v453_v43 = vmul.f32 %v563_v39, %v400_v7  ;;  %v461_v44 = vmul.f32 %v571_v40, %v440_v34 }
  0xec   :  { %497 = vst [vmem:[%s822_s4 + $0x58] sm:$0xff] %v481_v36  ;;  %v253_v45 = vpop.f32.mrf.mxu0  ;;  %v285_v46 = vpop.f32.mrf.mxu1 }
  0xed   :  { %487 = vst [vmem:[%s822_s4 + $0x8] sm:$0xff] %v471_v41  ;;  %495 = vst [vmem:[%s822_s4 + $0x48] sm:$0xff] %v479_v42  ;;  %v476_v48 = vadd.f32 %v751_v14, %v453_v43  ;;  %v484_v49 = vadd.f32 %v751_v14, %v461_v44  ;;  %v451_v50 = vmul.f32 %v390_v5, %v253_v45 }
  0xee   :  { %v459_v51 = vmul.f32 %v430_v16, %v285_v46  ;;  %v564_v52 = vpop.f32.mrf.mxu0  ;;  %v572_v53 = vpop.f32.mrf.mxu1 }
  0xef   :  { %492 = vst [vmem:[%s822_s4 + $0x30] sm:$0xff] %v476_v48  ;;  %500 = vst [vmem:[%s822_s4 + $0x70] sm:$0xff] %v484_v49  ;;  %v474_v54 = vadd.f32 %v751_v14, %v451_v50  ;;  %v454_v56 = vmul.f32 %v564_v52, %v405_v8  ;;  %v462_v57 = vmul.f32 %v572_v53, %v445_v47 }
  0xf0   :  { %v482_v55 = vadd.f32 %v751_v14, %v459_v51  ;;  %v256_v58 = vpop.f32.mrf.mxu0  ;;  %v288_v59 = vpop.f32.mrf.mxu1 }
  0xf1   :  { %490 = vst [vmem:[%s822_s4 + $0x20] sm:$0xff] %v474_v54  ;;  %v477_v60 = vadd.f32 %v751_v14, %v454_v56  ;;  %v485_v61 = vadd.f32 %v751_v14, %v462_v57  ;;  %v452_v62 = vmul.f32 %v746_v6, %v256_v58  ;;  %v460_v63 = vmul.f32 %v435_v27, %v288_v59 }
  0xf2   :  { %498 = vst [vmem:[%s822_s4 + $0x60] sm:$0xff] %v482_v55 }
  0xf3   :  { %493 = vst [vmem:[%s822_s4 + $0x38] sm:$0xff] %v477_v60  ;;  %501 = vst [vmem:[%s822_s4 + $0x78] sm:$0xff] %v485_v61  ;;  %v475_v0 = vadd.f32 %v751_v14, %v452_v62  ;;  %v483_v1 = vadd.f32 %v751_v14, %v460_v63 }
  0xf5   :  { %491 = vst [vmem:[%s822_s4 + $0x28] sm:$0xff] %v475_v0  ;;  %499 = vst [vmem:[%s822_s4 + $0x68] sm:$0xff] %v483_v1 }

// kernel: gcn_autoencoder_forward.2
= control target key start
LH: loop header
LB: loop body
LE: loop exit
PB: predicated region body
PF: predicated region fallthrough
CT: control target
= control target key end

     0   :  { %v1011_v1 = vmov 0   ;;  %s1319_s1 = inlined_call_operand.vmem [shape: bf16[128,128], index: 1, kind: input, shape index: {}]   ;;  %s1320_s0 = inlined_call_operand.vmem [shape: s8[128,128], index: 0, kind: input, shape index: {}]   ;;  %s1321_s2 = inlined_call_operand.vmem [shape: f32[128,1], index: 2, kind: input, shape index: {}]   ;;  %s1322_s4 = inlined_call_operand.vmem [shape: f32[128,128], index: 4, kind: input, shape index: {}]   ;;  %s1323_s3 = inlined_call_operand.vmem [shape: f32[1,128], index: 3, kind: input, shape index: {}]   ;;  %s1324_s5 = inlined_call_operand.vmem [shape: bf16[128,128], index: 5, kind: output, shape index: {}]  }
   0x1   :  { %v1003_v0 = vld [vmem:[%s1319_s1 + $0x38] sm:$0xff]   ;;  %1001 = vset.pattern.permute.xlu0 %v1011_v1  ;;  %1002 = vset.pattern.permute.xlu1 %v1011_v1  ;;  %v1004_v2 = vld [vmem:[%s1319_s1 + $0x30] sm:$0xff]   ;;  %v1005_v3 = vld [vmem:[%s1319_s1 + $0x28] sm:$0xff]  }
   0x2   :  { %912 = vmatprep.subr.bf16.mxu0 %v1003_v0  ;;  %v1006_v4 = vld [vmem:[%s1319_s1 + $0x20] sm:$0xff]   ;;  %v1007_v10 = vld [vmem:[%s1319_s1 + $0x18] sm:$0xff]   ;;  %v340_v12 = vld [vmem:[%s1321_s2 + $0x10] sm:$0xff] }
   0x3   :  { %913 = vmatpush3.bf16.msra.mxu0 %v1003_v0  ;;  %v62_v5 = vld [vmem:[%s1320_s0] sm:$0x3]  ;;  %v63_v6 = vld [vmem:[%s1320_s0 + $0x2] sm:$0x3]  ;;  %382 = vperm.xlu1 %1002, %v340_v12   ;;  %v339_v13 = vld [vmem:[%s1321_s2 + $0x8] sm:$0xff] }
   0x4   :  { %914 = vmatprep.subr.bf16.mxu0 %v1004_v2  ;;  %v78_v7 = vunpack.c.l.s8.bf16 %v62_v5  ;;  %v79_v8 = vunpack.c.l.s8.bf16 %v63_v6  ;;  %v338_v11 = vld [vmem:[%s1321_s2] sm:$0xff]  ;;  %v341_v14 = vld [vmem:[%s1321_s2 + $0x18] sm:$0xff]  ;;  %v1008_v15 = vld [vmem:[%s1319_s1 + $0x10] sm:$0xff]  }
   0x5   :  { %372 = vperm.xlu0 %1001, %v338_v11   ;;  %v520_v16 = vld [vmem:[%s1322_s4 + $0x78] sm:$0xff]  ;;  %v342_v17 = vld [vmem:[%s1321_s2 + $0x20] sm:$0xff]  ;;  %v343_v18 = vld [vmem:[%s1321_s2 + $0x28] sm:$0xff] }
   0x6   :  { %v768_v9 = vcombine.low %v78_v7, %v79_v8  ;;  %944 = vmatprep.subr.mxu1 %v520_v16  ;;  %v519_v19 = vld [vmem:[%s1322_s4 + $0x70] sm:$0xff]  ;;  %v1009_v20 = vld [vmem:[%s1319_s1 + $0x8] sm:$0xff]   ;;  %v1010_v22 = vld [vmem:[%s1319_s1] sm:$0xff]  }
   0x7   :  { %915 = vmatpush3.bf16.msra.mxu0 %v1004_v2  ;;  %387 = vperm.xlu1 %1002, %v341_v14   ;;  %v518_v21 = vld [vmem:[%s1322_s4 + $0x68] sm:$0xff]  ;;  %v64_v23 = vld [vmem:[%s1320_s0 + $0x4] sm:$0x3]  ;;  %v65_v24 = vld [vmem:[%s1320_s0 + $0x6] sm:$0x3] }
   0x8   :  { %916 = vmatprep.subr.bf16.mxu0 %v1005_v3  ;;  %928 = vmatprep.mubr.bf16.mxu0 %v768_v9  ;;  %v344_v25 = vld [vmem:[%s1321_s2 + $0x30] sm:$0xff]  ;;  %v345_v26 = vld [vmem:[%s1321_s2 + $0x38] sm:$0xff]  ;;  %v66_v27 = vld [vmem:[%s1320_s0 + $0x8] sm:$0x3]  ;;  %v80_v30 = vunpack.c.l.s8.bf16 %v64_v23  ;;  %v81_v31 = vunpack.c.l.s8.bf16 %v65_v24 }
   0x9   :  { %377 = vperm.xlu0 %1001, %v339_v13   ;;  %945 = vmatpush3.msra.mxu1 %v520_v16  ;;  %v67_v28 = vld [vmem:[%s1320_s0 + $0xa] sm:$0x3]  ;;  %v517_v29 = vld [vmem:[%s1322_s4 + $0x60] sm:$0xff]  ;;  %v516_v32 = vld [vmem:[%s1322_s4 + $0x58] sm:$0xff]  ;;  %v82_v33 = vunpack.c.l.s8.bf16 %v66_v27 }
   0xa   :  { %946 = vmatprep.subr.mxu1 %v519_v19  ;;  %v83_v34 = vunpack.c.l.s8.bf16 %v67_v28  ;;  %v346_v35 = vld [vmem:[%s1321_s2 + $0x40] sm:$0xff]  ;;  %v347_v36 = vld [vmem:[%s1321_s2 + $0x48] sm:$0xff]  ;;  %v515_v37 = vld [vmem:[%s1322_s4 + $0x50] sm:$0xff]  ;;  %v769_v38 = vcombine.low %v80_v30, %v81_v31 }
   0xb   :  { %917 = vmatpush3.bf16.msra.mxu0 %v1005_v3  ;;  %397 = vperm.xlu1 %1002, %v343_v18   ;;  %v68_v40 = vld [vmem:[%s1320_s0 + $0xc] sm:$0x3]  ;;  %v69_v41 = vld [vmem:[%s1320_s0 + $0xe] sm:$0x3]  ;;  %v348_v42 = vld [vmem:[%s1321_s2 + $0x50] sm:$0xff] }
   0xc   :  { %918 = vmatprep.subr.bf16.mxu0 %v1006_v4  ;;  %947 = vmatpush3.msra.mxu1 %v519_v19  ;;  %v770_v39 = vcombine.low %v82_v33, %v83_v34  ;;  %v70_v43 = vld [vmem:[%s1320_s0 + $0x10] sm:$0x3]  ;;  %v71_v44 = vld [vmem:[%s1320_s0 + $0x12] sm:$0x3]  ;;  %v349_v45 = vld [vmem:[%s1321_s2 + $0x58] sm:$0xff]  ;;  %v84_v47 = vunpack.c.l.s8.bf16 %v68_v40  ;;  %v85_v48 = vunpack.c.l.s8.bf16 %v69_v41 }
   0xd   :  { %392 = vperm.xlu0 %1001, %v342_v17   ;;  %948 = vmatprep.subr.mxu1 %v518_v21  ;;  %v514_v46 = vld [vmem:[%s1322_s4 + $0x48] sm:$0xff]  ;;  %v86_v49 = vunpack.c.l.s8.bf16 %v70_v43  ;;  %v87_v50 = vunpack.c.l.s8.bf16 %v71_v44  ;;  %v350_v51 = vld [vmem:[%s1321_s2 + $0x60] sm:$0xff]  ;;  %v512_v54 = vld [vmem:[%s1322_s4 + $0x38] sm:$0xff] }
   0xe   :  { %949 = vmatpush3.msra.mxu1 %v518_v21  ;;  %v513_v52 = vld [vmem:[%s1322_s4 + $0x40] sm:$0xff]  ;;  %v351_v53 = vld [vmem:[%s1321_s2 + $0x68] sm:$0xff]  ;;  %v771_v55 = vcombine.low %v84_v47, %v85_v48  ;;  %v72_v57 = vld [vmem:[%s1320_s0 + $0x14] sm:$0x3] }
   0xf   :  { %919 = vmatpush3.bf16.msra.mxu0 %v1006_v4  ;;  %407 = vperm.xlu1 %1002, %v345_v26   ;;  %v772_v56 = vcombine.low %v86_v49, %v87_v50  ;;  %v73_v58 = vld [vmem:[%s1320_s0 + $0x16] sm:$0x3]  ;;  %v74_v60 = vld [vmem:[%s1320_s0 + $0x18] sm:$0x3]  ;;  %v75_v61 = vld [vmem:[%s1320_s0 + $0x1a] sm:$0x3]  ;;  %v88_v0 = vunpack.c.l.s8.bf16 %v72_v57 }
  0x10   :  { %920 = vmatprep.subr.bf16.mxu0 %v1007_v10  ;;  %950 = vmatprep.subr.mxu1 %v517_v29  ;;  %v352_v59 = vld [vmem:[%s1321_s2 + $0x70] sm:$0xff]  ;;  %v353_v62 = vld [vmem:[%s1321_s2 + $0x78] sm:$0xff]  ;;  %v89_v1 = vunpack.c.l.s8.bf16 %v73_v58  ;;  %v90_v2 = vunpack.c.l.s8.bf16 %v74_v60  ;;  %v91_v3 = vunpack.c.l.s8.bf16 %v75_v61  ;;  %v510_v11 = vld [vmem:[%s1322_s4 + $0x28] sm:$0xff] }
  0x11   :  { %402 = vperm.xlu0 %1001, %v344_v25   ;;  %951 = vmatpush3.msra.mxu1 %v517_v29  ;;  %v511_v63 = vld [vmem:[%s1322_s4 + $0x30] sm:$0xff]  ;;  %v76_v6 = vld [vmem:[%s1320_s0 + $0x1c] sm:$0x3]  ;;  %v77_v7 = vld [vmem:[%s1320_s0 + $0x1e] sm:$0x3] }
  0x12   :  { %952 = vmatprep.subr.mxu1 %v516_v32  ;;  %v773_v4 = vcombine.low %v88_v0, %v89_v1  ;;  %v774_v5 = vcombine.low %v90_v2, %v91_v3  ;;  %v92_v8 = vunpack.c.l.s8.bf16 %v76_v6  ;;  %v93_v9 = vunpack.c.l.s8.bf16 %v77_v7  ;;  %v509_v12 = vld [vmem:[%s1322_s4 + $0x20] sm:$0xff]  ;;  %v508_v13 = vld [vmem:[%s1322_s4 + $0x18] sm:$0xff]  ;;  %v507_v14 = vld [vmem:[%s1322_s4 + $0x10] sm:$0xff] }
  0x13   :  { %921 = vmatpush3.bf16.msra.mxu0 %v1007_v10  ;;  %417 = vperm.xlu1 %1002, %v347_v36   ;;  %v505_v16 = vld [vmem:[%s1322_s4] sm:$0xff] }
  0x14   :  { %922 = vmatprep.subr.bf16.mxu0 %v1008_v15  ;;  %953 = vmatpush3.msra.mxu1 %v516_v32  ;;  %v775_v10 = vcombine.low %v92_v8, %v93_v9  ;;  %v1229_v28 = vld [vmem:[%s1323_s3] ss:$0 sm:$0xff] }
  0x15   :  { %412 = vperm.xlu0 %1001, %v346_v35   ;;  %954 = vmatprep.subr.mxu1 %v515_v37 }
  0x16   :  { %955 = vmatpush3.msra.mxu1 %v515_v37 }
  0x17   :  { %923 = vmatpush3.bf16.msra.mxu0 %v1008_v15  ;;  %427 = vperm.xlu1 %1002, %v349_v45   ;;  %v506_v15 = vld [vmem:[%s1322_s4 + $0x8] sm:$0xff] }
  0x18   :  { %924 = vmatprep.subr.bf16.mxu0 %v1009_v20  ;;  %956 = vmatprep.subr.mxu1 %v514_v46 }
  0x19   :  { %422 = vperm.xlu0 %1001, %v348_v42   ;;  %957 = vmatpush3.msra.mxu1 %v514_v46 }
  0x1a   :  { %958 = vmatprep.subr.mxu1 %v513_v52 }
  0x1b   :  { %925 = vmatpush3.bf16.msra.mxu0 %v1009_v20  ;;  %437 = vperm.xlu1 %1002, %v351_v53  }
  0x1c   :  { %926 = vmatprep.subr.bf16.mxu0 %v1010_v22  ;;  %959 = vmatpush3.msra.mxu1 %v513_v52 }
  0x1d   :  { %432 = vperm.xlu0 %1001, %v350_v51   ;;  %960 = vmatprep.subr.mxu1 %v512_v54 }
  0x1e   :  { %961 = vmatpush3.msra.mxu1 %v512_v54 }
  0x1f   :  { %927 = vmatpush3.bf16.msra.mxu0 %v1010_v22  ;;  %447 = vperm.xlu1 %1002, %v353_v62  }
  0x20   :  { %962 = vmatprep.subr.mxu1 %v511_v63 }
  0x21   :  { %442 = vperm.xlu0 %1001, %v352_v59   ;;  %963 = vmatpush3.msra.mxu1 %v511_v63 }
  0x22   :  { %929 = vmatmul.mubr.bf16.vlgmr.msra.gmra.mxu0 %v769_v38  ;;  %964 = vmatprep.subr.mxu1 %v510_v11 }
  0x23   :  { %932 = vmatprep.mubr.bf16.mxu0 %v770_v39  ;;  %965 = vmatpush3.msra.mxu1 %v510_v11 }
  0x24   :  { %966 = vmatprep.subr.mxu1 %v509_v12 }
  0x25   :  { %967 = vmatpush3.msra.mxu1 %v509_v12 }
  0x26   :  { %968 = vmatprep.subr.mxu1 %v508_v13 }
  0x27   :  { %969 = vmatpush3.msra.mxu1 %v508_v13 }
  0x28   :  { %970 = vmatprep.subr.mxu1 %v507_v14 }
  0x29   :  { %971 = vmatpush3.msra.mxu1 %v507_v14 }
  0x2a   :  { %933 = vmatmul.mubr.bf16.gmra.mxu0 %v771_v55  ;;  %972 = vmatprep.subr.mxu1 %v506_v15 }
  0x2b   :  { %936 = vmatprep.mubr.bf16.mxu0 %v772_v56  ;;  %973 = vmatpush3.msra.mxu1 %v506_v15 }
  0x2c   :  { %974 = vmatprep.subr.mxu1 %v505_v16 }
  0x2d   :  { %975 = vmatpush3.msra.mxu1 %v505_v16 }
  0x32   :  { %937 = vmatmul.mubr.bf16.gmra.mxu0 %v773_v4 }
  0x33   :  { %940 = vmatprep.mubr.bf16.mxu0 %v774_v5 }
  0x3a   :  { %941 = vmatmul.mubr.bf16.gmra.mxu0 %v775_v10 }
  0x7e   :  { %v1212_v18 = vpop.permute.xlu1 %382 }
  0x80   :  { %v1210_v17 = vpop.permute.xlu0 %372 }
  0x82   :  { %v1216_v20 = vpop.permute.xlu1 %387 }
  0x84   :  { %v1214_v19 = vpop.permute.xlu0 %377 }
  0x86   :  { %v1220_v22 = vpop.permute.xlu1 %397 }
  0x88   :  { %v1218_v21 = vpop.permute.xlu0 %392 }
  0x8a   :  { %v1232_v31 = vpop.permute.xlu1 %407 }
  0x8c   :  { %v1222_v25 = vpop.permute.xlu0 %402 }
  0x8e   :  { %v1242_v44 = vpop.permute.xlu1 %417 }
  0x90   :  { %v1237_v38 = vpop.permute.xlu0 %412 }
  0x92   :  { %v1252_v58 = vpop.permute.xlu1 %427 }
  0x94   :  { %v1246_v50 = vpop.permute.xlu0 %422 }
  0x96   :  { %v1262_v9 = vpop.permute.xlu1 %437 }
  0x98   :  { %v1257_v2 = vpop.permute.xlu0 %432 }
  0x9c   :  { %v1266_v14 = vpop.permute.xlu0 %442 }
  0xe2   :  { %v930_v23 = vpop.f32.mrf.mxu0 }
  0xe3   :  { %v452_v27 = vmul.f32 %v930_v23, %v1212_v18 }
  0xe4   :  { %v240_v24 = vpop.f32.mrf.mxu0 }
  0xe5   :  { %v450_v26 = vmul.f32 %v1210_v17, %v240_v24  ;;  %v475_v36 = vadd.f32 %v1229_v28, %v452_v27 }
  0xe6   :  { %v931_v29 = vpop.f32.mrf.mxu0 }
  0xe7   :  { %v473_v30 = vadd.f32 %v1229_v28, %v450_v26  ;;  %v453_v33 = vmul.f32 %v931_v29, %v1216_v20  ;;  %v491_v45 = vmax.f32 %v475_v36, 0.0 }
  0xe8   :  { %v243_v32 = vpop.f32.mrf.mxu0 }
  0xe9   :  { %v451_v34 = vmul.f32 %v1214_v19, %v243_v32  ;;  %v489_v35 = vmax.f32 %v473_v30, 0.0  ;;  %v476_v41 = vadd.f32 %v1229_v28, %v453_v33  ;;  %v1272_v30 = vpop.permute.xlu1 %447 }
  0xea   :  { %v934_v37 = vpop.f32.mrf.mxu0 }
  0xeb   :  { %v474_v39 = vadd.f32 %v1229_v28, %v451_v34  ;;  %976 = vmatprep.mubr.f32.mxu1 %v489_v35  ;;  %v456_v46 = vmul.f32 %v934_v37, %v1222_v25  ;;  %v492_v51 = vmax.f32 %v476_v41, 0.0 }
  0xec   :  { %v256_v40 = vpop.f32.mrf.mxu0 }
  0xed   :  { %v490_v42 = vmax.f32 %v474_v39, 0.0  ;;  %v454_v43 = vmul.f32 %v1218_v21, %v256_v40  ;;  %v479_v55 = vadd.f32 %v1229_v28, %v456_v46 }
  0xee   :  { %v935_v47 = vpop.f32.mrf.mxu0 }
  0xef   :  { %v477_v48 = vadd.f32 %v1229_v28, %v454_v43  ;;  %977 = vmatmul.mubr.f32.vlgmr.msra.gmra.mxu1 %v490_v42  ;;  %v457_v53 = vmul.f32 %v935_v47, %v1232_v31  ;;  %v495_v63 = vmax.f32 %v479_v55, 0.0 }
  0xf0   :  { %v259_v49 = vpop.f32.mrf.mxu0  ;;  %979 = vmatprep.mubr.f32.mxu1 %v491_v45 }
  0xf1   :  { %v493_v52 = vmax.f32 %v477_v48, 0.0  ;;  %v455_v54 = vmul.f32 %v1220_v22, %v259_v49  ;;  %v480_v60 = vadd.f32 %v1229_v28, %v457_v53 }
  0xf2   :  { %v938_v56 = vpop.f32.mrf.mxu0 }
  0xf3   :  { %v478_v57 = vadd.f32 %v1229_v28, %v455_v54  ;;  %980 = vmatmul.mubr.f32.gmra.mxu1 %v492_v51  ;;  %v460_v0 = vmul.f32 %v938_v56, %v1246_v50  ;;  %v496_v5 = vmax.f32 %v480_v60, 0.0 }
  0xf4   :  { %v272_v59 = vpop.f32.mrf.mxu0  ;;  %982 = vmatprep.mubr.f32.mxu1 %v493_v52 }
  0xf5   :  { %v494_v61 = vmax.f32 %v478_v57, 0.0  ;;  %v458_v62 = vmul.f32 %v1237_v38, %v272_v59  ;;  %v483_v10 = vadd.f32 %v1229_v28, %v460_v0 }
  0xf6   :  { %v939_v1 = vpop.f32.mrf.mxu0 }
  0xf7   :  { %v481_v3 = vadd.f32 %v1229_v28, %v458_v62  ;;  %983 = vmatmul.mubr.f32.gmra.mxu1 %v494_v61  ;;  %v461_v7 = vmul.f32 %v939_v1, %v1252_v58  ;;  %v499_v24 = vmax.f32 %v483_v10, 0.0 }
  0xf8   :  { %v275_v4 = vpop.f32.mrf.mxu0  ;;  %985 = vmatprep.mubr.f32.mxu1 %v495_v63 }
  0xf9   :  { %v497_v6 = vmax.f32 %v481_v3, 0.0  ;;  %v459_v8 = vmul.f32 %v1242_v44, %v275_v4  ;;  %v484_v15 = vadd.f32 %v1229_v28, %v461_v7 }
  0xfa   :  { %v942_v11 = vpop.f32.mrf.mxu0 }
  0xfb   :  { %v482_v12 = vadd.f32 %v1229_v28, %v459_v8  ;;  %986 = vmatmul.mubr.f32.gmra.mxu1 %v496_v5  ;;  %v464_v26 = vmul.f32 %v942_v11, %v1266_v14  ;;  %v500_v33 = vmax.f32 %v484_v15, 0.0 }
  0xfc   :  { %v288_v13 = vpop.f32.mrf.mxu0  ;;  %988 = vmatprep.mubr.f32.mxu1 %v497_v6 }
  0xfd   :  { %v498_v16 = vmax.f32 %v482_v12, 0.0  ;;  %v462_v23 = vmul.f32 %v1257_v2, %v288_v13  ;;  %v487_v37 = vadd.f32 %v1229_v28, %v464_v26 }
  0xfe   :  { %v943_v27 = vpop.f32.mrf.mxu0 }
  0xff   :  { %v485_v29 = vadd.f32 %v1229_v28, %v462_v23  ;;  %989 = vmatmul.mubr.f32.gmra.mxu1 %v498_v16  ;;  %v465_v35 = vmul.f32 %v943_v27, %v1272_v30  ;;  %v503_v42 = vmax.f32 %v487_v37, 0.0 }
 0x100   :  { %v291_v32 = vpop.f32.mrf.mxu0  ;;  %991 = vmatprep.mubr.f32.mxu1 %v499_v24 }
 0x101   :  { %v501_v34 = vmax.f32 %v485_v29, 0.0  ;;  %v463_v36 = vmul.f32 %v1262_v9, %v291_v32  ;;  %v488_v40 = vadd.f32 %v1229_v28, %v465_v35 }
 0x103   :  { %v486_v39 = vadd.f32 %v1229_v28, %v463_v36  ;;  %992 = vmatmul.mubr.f32.gmra.mxu1 %v500_v33  ;;  %v504_v43 = vmax.f32 %v488_v40, 0.0 }
 0x104   :  { %994 = vmatprep.mubr.f32.mxu1 %v501_v34 }
 0x105   :  { %v502_v41 = vmax.f32 %v486_v39, 0.0 }
 0x107   :  { %995 = vmatmul.mubr.f32.gmra.mxu1 %v502_v41 }
 0x108   :  { %997 = vmatprep.mubr.f32.mxu1 %v503_v42 }
 0x10b   :  { %998 = vmatmul.mubr.f32.gmra.mxu1 %v504_v43 }
 0x1af   :  { %v978_v45 = vpop.f32.mrf.mxu1 }
 0x1b0   :  { %v667_v47 = vmul.f32 %v978_v45, %v1214_v19 }
 0x1b1   :  { %v587_v46 = vpop.f32.mrf.mxu1 }
 0x1b2   :  { %v666_v48 = vmul.f32 %v587_v46, %v1210_v17 }
 0x1b3   :  { %v981_v49 = vpop.f32.mrf.mxu1 }
 0x1b4   :  { %v820_v51 = vpack.c.bf16 %v667_v47, %v666_v48  ;;  %v669_v28 = vmul.f32 %v981_v49, %v1216_v20 }
 0x1b5   :  { %v597_v52 = vpop.f32.mrf.mxu1 }
 0x1b6   :  { %821 = vst [vmem:[%s1324_s5] sm:$0xff] %v820_v51   ;;  %v668_v53 = vmul.f32 %v597_v52, %v1212_v18 }
 0x1b7   :  { %v984_v54 = vpop.f32.mrf.mxu1 }
 0x1b8   :  { %v825_v55 = vpack.c.bf16 %v669_v28, %v668_v53  ;;  %v671_v17 = vmul.f32 %v984_v54, %v1220_v22 }
 0x1b9   :  { %v607_v56 = vpop.f32.mrf.mxu1 }
 0x1ba   :  { %857 = vst [vmem:[%s1324_s5 + $0x8] sm:$0xff] %v825_v55   ;;  %v670_v19 = vmul.f32 %v607_v56, %v1218_v21 }
 0x1bb   :  { %v987_v57 = vpop.f32.mrf.mxu1 }
 0x1bc   :  { %v830_v59 = vpack.c.bf16 %v671_v17, %v670_v19  ;;  %v673_v18 = vmul.f32 %v987_v57, %v1232_v31 }
 0x1bd   :  { %v617_v60 = vpop.f32.mrf.mxu1 }
 0x1be   :  { %858 = vst [vmem:[%s1324_s5 + $0x10] sm:$0xff] %v830_v59   ;;  %v672_v20 = vmul.f32 %v617_v60, %v1222_v25 }
 0x1bf   :  { %v990_v61 = vpop.f32.mrf.mxu1 }
 0x1c0   :  { %v835_v62 = vpack.c.bf16 %v673_v18, %v672_v20  ;;  %v675_v21 = vmul.f32 %v990_v61, %v1242_v44 }
 0x1c1   :  { %v627_v63 = vpop.f32.mrf.mxu1 }
 0x1c2   :  { %859 = vst [vmem:[%s1324_s5 + $0x18] sm:$0xff] %v835_v62   ;;  %v674_v22 = vmul.f32 %v627_v63, %v1237_v38 }
 0x1c3   :  { %v993_v0 = vpop.f32.mrf.mxu1 }
 0x1c4   :  { %v840_v1 = vpack.c.bf16 %v675_v21, %v674_v22  ;;  %v677_v25 = vmul.f32 %v993_v0, %v1252_v58 }
 0x1c5   :  { %v637_v3 = vpop.f32.mrf.mxu1 }
 0x1c6   :  { %860 = vst [vmem:[%s1324_s5 + $0x20] sm:$0xff] %v840_v1   ;;  %v676_v31 = vmul.f32 %v637_v3, %v1246_v50 }
 0x1c7   :  { %v996_v4 = vpop.f32.mrf.mxu1 }
 0x1c8   :  { %v845_v5 = vpack.c.bf16 %v677_v25, %v676_v31  ;;  %v679_v38 = vmul.f32 %v996_v4, %v1262_v9 }
 0x1c9   :  { %v647_v6 = vpop.f32.mrf.mxu1 }
 0x1ca   :  { %861 = vst [vmem:[%s1324_s5 + $0x28] sm:$0xff] %v845_v5   ;;  %v678_v44 = vmul.f32 %v647_v6, %v1257_v2 }
 0x1cb   :  { %v999_v7 = vpop.f32.mrf.mxu1 }
 0x1cc   :  { %v850_v8 = vpack.c.bf16 %v679_v38, %v678_v44  ;;  %v681_v50 = vmul.f32 %v999_v7, %v1272_v30 }
 0x1cd   :  { %v657_v10 = vpop.f32.mrf.mxu1 }
 0x1ce   :  { %862 = vst [vmem:[%s1324_s5 + $0x30] sm:$0xff] %v850_v8   ;;  %v680_v58 = vmul.f32 %v657_v10, %v1266_v14 }
 0x1d0   :  { %v855_v11 = vpack.c.bf16 %v681_v50, %v680_v58 }
 0x1d2   :  { %863 = vst [vmem:[%s1324_s5 + $0x38] sm:$0xff] %v855_v11  }

</bundles_post_ra>
